<compile_context>
chip_gen: v6e
topology: v6e:2x2x1
jax: 0.10.0
libtpu: 0.0.40
codegen_flags: <defaults>
</compile_context>

<pallas_src>
import functools

import jax
import jax.numpy as jnp
from jax.experimental import pallas as pl
from jax.experimental.pallas import tpu as pltpu


def _round_up(x, m):
    return ((x + m - 1) // m) * m


def _vmem_capacity_bytes():
    try:
        info = pltpu.get_tpu_info()
        cap = getattr(info, "vmem_capacity_bytes", None)
        if cap:
            return int(cap)
    except Exception:
        pass
    return 64 * 1024 * 1024  # conservative (v7x per-TC)


def _num_tensorcores():
    """Best-effort TensorCore-per-device count (megacore detection)."""
    try:
        d = jax.devices()[0]
        if d.platform != "tpu":
            return 1
        nc = getattr(d, "num_cores", None)
        if nc:
            return int(nc)
        if "v7" in str(getattr(d, "device_kind", "")).lower():
            return 2
    except Exception:
        pass
    return 1


def _vq_kernel(x_ref, et_ref, e_ref, nhe2_ref, q_ref, counts_ref, sq_ref, *,
               block_n, codebook_size, block_k, dim, n_total, steps_per_shard,
               needs_mask):
    p = pl.program_id(0)          # parallel shard (megacore)
    s = pl.program_id(1)          # sequential step within the shard

    # counts/sq output blocks keep a constant index over `s`, so they are
    # VMEM-resident accumulators; zero them at the start of each shard.
    @pl.when(s == 0)
    def _():
        counts_ref[...] = jnp.zeros_like(counts_ref)
        sq_ref[...] = jnp.zeros_like(sq_ref)

    x = x_ref[...].astype(jnp.float32)                  # (bn, D)
    x_mm = x.astype(et_ref.dtype)                       # f32 or bf16 for the MXU

    n_kt = codebook_size // block_k

    # ---- pass 1: running (max score, argmax) over K tiles -------------------
    # argmax_k -(||x||^2 - 2 x.e_k + ||e_k||^2) == argmax_k (x.e_k - 0.5||e_k||^2)
    # (the ||x||^2 term is row-constant; -0.5||e||^2 and embed^T are hoisted to
    # the wrapper).  Strict '>' in the cross-tile update keeps first-index
    # tie-break semantics (earlier tile wins ties, matching torch/jnp argmax).
    best_idx = None
    best_score = None
    for kt in range(n_kt):
        k0 = kt * block_k
        score = jnp.dot(x_mm, et_ref[:, k0:k0 + block_k],
                        preferred_element_type=jnp.float32)      # (bn, bk) MXU
        score = score + nhe2_ref[:, k0:k0 + block_k]             # (+ (1, bk))
        a_t = k0 + jnp.argmax(score, axis=-1).astype(jnp.int32)[:, None]
        if kt == 0:
            best_idx = a_t
            if n_kt > 1:
                best_score = jnp.max(score, axis=-1, keepdims=True)
        else:
            m_t = jnp.max(score, axis=-1, keepdims=True)
            upd = m_t > best_score
            best_idx = jnp.where(upd, a_t, best_idx)
            best_score = jnp.where(upd, m_t, best_score)

    if needs_mask:
        # Padded rows: poison the winner index so they contribute nothing to
        # counts / dequant / loss (single (bn,1) select, no (bn,K) mask work).
        row0 = (p * steps_per_shard + s) * block_n
        rows = row0 + jax.lax.broadcasted_iota(jnp.int32, (block_n, 1), 0)
        best_idx = jnp.where(rows < n_total, best_idx, -1)

    # ---- pass 2: winner one-hot per K tile -> counts + dequant --------------
    q = jnp.zeros((block_n, dim), jnp.float32)
    for kt in range(n_kt):
        k0 = kt * block_k
        lanes = k0 + jax.lax.broadcasted_iota(jnp.int32, (block_n, block_k), 1)
        onehot = (lanes == best_idx).astype(jnp.float32)         # (bn, bk)
        csum = jnp.sum(onehot, axis=0).reshape(1, 1, block_k)
        counts_ref[:, :, pl.ds(k0, block_k)] += csum
        # dequantize == F.embedding(ind, embed) as a one-hot matmul (exact:
        # products are 0*e or 1*e), accumulated over K tiles.
        q = q + jnp.dot(onehot, e_ref[k0:k0 + block_k, :],
                        preferred_element_type=jnp.float32)      # (bn, D)

    diff = q - x
    # straight-through estimator: forward value is input + (q - input)
    q_ref[...] = (x + diff).astype(q_ref.dtype)
    sq_ref[...] += jnp.sum(diff * diff, axis=0).reshape(1, 1, dim)


def vector_quantize(x, embed, *, commitment=1.0, block_n=None, block_k=None,
                    num_parallel=None, matmul_dtype=None):
    """Forward pass of VectorQuantize (eval mode).

    Returns (quantize, embed_num, commit_loss, perplexity), matching the
    PyTorch module's forward().

    matmul_dtype: optionally jnp.bfloat16 for the distance matmul (recommended
    on v5e); may flip near-tie code assignments vs. f32.  Default None (f32).
    """
    orig_shape = x.shape
    dim = orig_shape[-1]
    K, ed = embed.shape
    assert ed == dim, "codebook dim mismatch"
    xf = x.reshape(-1, dim)
    N = xf.shape[0]

    # ---- K tile size ---------------------------------------------------------
    if block_k is None:
        if K % 512 == 0:
            block_k = 512
        elif K % 256 == 0:
            block_k = 256
        elif K % 128 == 0:
            block_k = 128
        else:
            block_k = K
    assert K % block_k == 0, "block_k must divide codebook_size"

    # ---- generation-aware VMEM budgeting & row tile size ----------------------
    itemsize_x = jnp.dtype(x.dtype).itemsize
    mm_itemsize = jnp.dtype(matmul_dtype).itemsize if matmul_dtype is not None else 4
    vmem_cap = _vmem_capacity_bytes()
    # resident (Buffered(1)) inputs: embed^T (mm dtype), embed (f32), -0.5||e||^2
    resident = dim * K * mm_itemsize + K * dim * 4 + K * 4
    usable = int(vmem_cap * 0.75) - resident - (2 << 20)
    usable = max(usable, 4 << 20)
    per_row = (2 * dim * itemsize_x        # x tile (double-buffered)
               + 2 * dim * itemsize_x      # q tile (double-buffered)
               + 4 * dim * 4               # x f32 / q acc / diff / row temporaries
               + dim * mm_itemsize         # x cast for the score matmul
               + 3 * block_k * 4           # per-K-tile score / one-hot / iota
               + 32)                       # best_score / best_idx / row mask
    if block_n is None:
        cap_rows = usable // max(per_row, 1)
        block_n = int(min(2048, cap_rows, _round_up(N, 8)))
        block_n = max(8, (block_n // 8) * 8)

    n_blocks = -(-N // block_n)
    if num_parallel is None:
        # Shard rows across TensorCores only on megacore parts (e.g. v7x).
        num_parallel = 2 if (_num_tensorcores() >= 2 and n_blocks >= 2) else 1
    P = int(num_parallel)

    n_pad = _round_up(N, P * block_n)
    steps = n_pad // (P * block_n)
    needs_mask = n_pad != N
    if needs_mask:
        xf = jnp.pad(xf, ((0, n_pad - N), (0, 0)))

    # ---- codebook-side work hoisted out of the grid loop ----------------------
    embed_f32 = embed.astype(jnp.float32)
    embed_t = embed_f32.T                                     # (D, K) for dist matmul
    if matmul_dtype is not None:
        embed_t = embed_t.astype(matmul_dtype)
    neg_half_e2 = (-0.5 * jnp.sum(embed_f32 * embed_f32, axis=1)).reshape(1, K)

    kernel = functools.partial(
        _vq_kernel, block_n=block_n, codebook_size=K, block_k=block_k, dim=dim,
        n_total=N, steps_per_shard=steps, needs_mask=needs_mask)

    out_shapes = (
        jax.ShapeDtypeStruct((n_pad, dim), x.dtype),          # quantize (straight-through)
        jax.ShapeDtypeStruct((P, 1, K), jnp.float32),         # per-shard code counts
        jax.ShapeDtypeStruct((P, 1, dim), jnp.float32),       # per-shard, per-lane sq-error
    )
    resident_mode = pl.Buffered(1)   # constant-index inputs: hold a single copy
    in_specs = [
        pl.BlockSpec((block_n, dim), lambda p, s: (p * steps + s, 0)),   # x tile
        pl.BlockSpec((dim, K), lambda p, s: (0, 0), pipeline_mode=resident_mode),
        pl.BlockSpec((K, dim), lambda p, s: (0, 0), pipeline_mode=resident_mode),
        pl.BlockSpec((1, K), lambda p, s: (0, 0), pipeline_mode=resident_mode),
    ]
    out_specs = (
        pl.BlockSpec((block_n, dim), lambda p, s: (p * steps + s, 0)),
        pl.BlockSpec((1, 1, K), lambda p, s: (p, 0, 0)),      # resident over s
        pl.BlockSpec((1, 1, dim), lambda p, s: (p, 0, 0)),    # resident over s
    )
    vmem_limit = int(min(max(int(vmem_cap * 0.9), 32 << 20), 128 << 20))

    q, counts_p, sq_p = pl.pallas_call(
        kernel,
        out_shape=out_shapes,
        grid_spec=pltpu.PrefetchScalarGridSpec(
            num_scalar_prefetch=0,
            grid=(P, steps),
            in_specs=in_specs,
            out_specs=out_specs,
        ),
        compiler_params=pltpu.CompilerParams(
            dimension_semantics=("parallel", "arbitrary"),
            vmem_limit_bytes=vmem_limit),
    )(xf, embed_t, embed_f32, neg_half_e2)

    # ---- tiny O(K) epilogue in the wrapper -------------------------------------
    counts = counts_p.reshape(P, K).sum(axis=0)               # (K,) f32, exact ints
    sq_sum = sq_p.sum()
    commit_loss = sq_sum / jnp.float32(N * dim) * jnp.float32(commitment)
    avg = counts / jnp.float32(N)
    perplexity = jnp.exp(-jnp.sum(avg * jnp.log(avg + 1e-10)))

    quantize = q[:N].reshape(orig_shape)
    # module semantics: embed_num = embed_onehot.type(input.dtype).sum(0)
    embed_num = counts.astype(x.dtype)
    return quantize, embed_num, commit_loss, perplexity


def _reference_forward(x, embed, commitment=1.0):
    """Pure-JAX reference mirroring the PyTorch forward (eval mode)."""
    shape = x.shape
    xf = x.reshape(-1, shape[-1]).astype(jnp.float32)
    e = embed.astype(jnp.float32)
    dist = -(jnp.sum(xf * xf, axis=1, keepdims=True)
             - 2.0 * xf @ e.T
             + jnp.sum(e * e, axis=1)[None, :])
    ind = jnp.argmax(dist, axis=-1)
    onehot = jax.nn.one_hot(ind, e.shape[0], dtype=jnp.float32)
    q = e[ind].reshape(shape)
    q_st = x + (q - x)
    commit_loss = jnp.mean((q_st - x) ** 2) * commitment
    avg = jnp.mean(onehot, axis=0)
    ppl = jnp.exp(-jnp.sum(avg * jnp.log(avg + 1e-10)))
    return q_st, onehot.sum(0), commit_loss, ppl


def _check(x, embed, **kw):
    outs = jax.block_until_ready(vector_quantize(x, embed, commitment=1.0, **kw))
    quantize, embed_num, commit_loss, perplexity = outs
    q_r, num_r, loss_r, ppl_r = _reference_forward(x, embed, 1.0)
    assert quantize.shape == x.shape and quantize.dtype == x.dtype
    assert embed_num.shape == (embed.shape[0],)
    assert jnp.allclose(quantize, q_r, atol=1e-5, rtol=1e-5)
    assert jnp.allclose(embed_num, num_r, atol=1e-5)
    assert jnp.allclose(commit_loss, loss_r, atol=1e-5, rtol=1e-5)
    assert jnp.allclose(perplexity, ppl_r, atol=1e-4, rtol=1e-4)


if __name__ == "__main__":
    # small but tile-friendly shapes: dim=32, codebook_size=128, B=2, T=64
    B, T, D, K = 2, 64, 32, 128
    key = jax.random.PRNGKey(0)
    kx, ke, kx2, ke2 = jax.random.split(key, 4)
    x = jax.random.normal(kx, (B, T, D), dtype=jnp.float32)
    # uniform_init (kaiming_uniform on a (K, D) tensor) ~ U(-1/sqrt(D), 1/sqrt(D))
    bound = 1.0 / (D ** 0.5)
    embed = jax.random.uniform(ke, (K, D), minval=-bound, maxval=bound,
                               dtype=jnp.float32)

    # main run (auto block_n / block_k / shard count)
    _check(x, embed)

    # ragged (masked) + forced 2-shard "parallel" path, single K tile
    x2 = jax.random.normal(kx2, (B, 65, D), dtype=jnp.float32)   # N=130 rows
    _check(x2, embed, block_n=8, num_parallel=2)

    # multi-K-tile path (K=256 with block_k=128) + ragged mask + 2 shards
    embed2 = jax.random.uniform(ke2, (256, D), minval=-bound, maxval=bound,
                                dtype=jnp.float32)
    _check(x2, embed2, block_n=16, num_parallel=2, block_k=128)

    print("KERNEL_OK")
</pallas_src>

<mosaic_0001>
module attributes {stable_mosaic.version = 11 : i64} {
  func.func @_vq_kernel(%arg0: i32, %arg1: i32, %arg2: memref<128x32xf32, #tpu.memory_space<vmem>>, %arg3: memref<32x128xf32, #tpu.memory_space<vmem>>, %arg4: memref<128x32xf32, #tpu.memory_space<vmem>>, %arg5: memref<1x128xf32, #tpu.memory_space<vmem>>, %arg6: memref<128x32xf32, #tpu.memory_space<vmem>>, %arg7: memref<1x1x128xf32, #tpu.memory_space<vmem>>, %arg8: memref<1x1x32xf32, #tpu.memory_space<vmem>>) attributes {dimension_semantics = [#tpu.dimension_semantics<parallel>, #tpu.dimension_semantics<arbitrary>], iteration_bounds = array<i64: 1, 1>, scalar_prefetch = 0 : i64, scratch_operands = 0 : i64, tpu.core_type = #tpu.core_type<tc>, window_params = [{transform_indices = @transform_0, window_bounds = array<i64: 128, 32>}, {pipeline_mode = #tpu.pipeline_mode<synchronous>, transform_indices = @transform_1, window_bounds = array<i64: 32, 128>}, {pipeline_mode = #tpu.pipeline_mode<synchronous>, transform_indices = @transform_2, window_bounds = array<i64: 128, 32>}, {pipeline_mode = #tpu.pipeline_mode<synchronous>, transform_indices = @transform_3, window_bounds = array<i64: 1, 128>}, {transform_indices = @transform_4, window_bounds = array<i64: 128, 32>}, {transform_indices = @transform_5, window_bounds = array<i64: 1, 1, 128>}, {transform_indices = @transform_6, window_bounds = array<i64: 1, 1, 32>}]} {
    %c0_i32 = arith.constant 0 : i32
    %0 = arith.cmpi eq, %arg1, %c0_i32 : i32
    %1 = arith.extui %0 : i1 to i32
    %c0_i32_0 = arith.constant 0 : i32
    %2 = arith.cmpi ne, %1, %c0_i32_0 : i32
    scf.if %2 {
      %cst_28 = arith.constant 0.000000e+00 : f32
      %38 = vector.broadcast %cst_28 : f32 to vector<1x1x128xf32>
      %c0_29 = arith.constant 0 : index
      %c0_30 = arith.constant 0 : index
      %c0_31 = arith.constant 0 : index
      %39 = vector.load %arg7[%c0_29, %c0_30, %c0_31] : memref<1x1x128xf32, #tpu.memory_space<vmem>>, vector<1x1x128xf32>
      tpu.vector_store %arg7[%c0_29, %c0_30, %c0_31], %38 {strides = array<i32>} : memref<1x1x128xf32, #tpu.memory_space<vmem>>, vector<1x1x128xf32>,
      %cst_32 = arith.constant 0.000000e+00 : f32
      %40 = vector.broadcast %cst_32 : f32 to vector<1x1x32xf32>
      %c0_33 = arith.constant 0 : index
      %c0_34 = arith.constant 0 : index
      %c0_35 = arith.constant 0 : index
      %41 = vector.load %arg8[%c0_33, %c0_34, %c0_35] : memref<1x1x32xf32, #tpu.memory_space<vmem>>, vector<1x1x32xf32>
      tpu.vector_store %arg8[%c0_33, %c0_34, %c0_35], %40 {strides = array<i32>} : memref<1x1x32xf32, #tpu.memory_space<vmem>>, vector<1x1x32xf32>,
    } else {
    }
    %c0 = arith.constant 0 : index
    %c0_1 = arith.constant 0 : index
    %3 = vector.load %arg2[%c0, %c0_1] : memref<128x32xf32, #tpu.memory_space<vmem>>, vector<128x32xf32>
    %c0_2 = arith.constant 0 : index
    %c0_3 = arith.constant 0 : index
    %4 = vector.load %arg3[%c0_2, %c0_3] : memref<32x128xf32, #tpu.memory_space<vmem>>, vector<32x128xf32>
    %cst = arith.constant dense<0.000000e+00> : vector<128x128xf32>
    %5 = tpu.matmul %3, %4, %cst {dimension_numbers = #tpu.dot_dimension_numbers<[1], [0], [0], [1], [0, 0, 1, 1], [], []>} : vector<128x32xf32>, vector<32x128xf32>, vector<128x128xf32> -> vector<128x128xf32>
    %c0_4 = arith.constant 0 : index
    %c0_5 = arith.constant 0 : index
    %6 = vector.load %arg5[%c0_4, %c0_5] : memref<1x128xf32, #tpu.memory_space<vmem>>, vector<1x128xf32>
    %7 = vector.broadcast %6 : vector<1x128xf32> to vector<128x128xf32>
    %8 = arith.addf %5, %7 : vector<128x128xf32>
    %9 = tpu.reduce_index %8 {axis = 1 : i32, kind = #tpu.reduction_kind<arg_max>} : vector<128x128xf32> -> vector<128xi32>
    %10 = vector.shape_cast %9 : vector<128xi32> to vector<128x1xi32>
    %c0_i32_6 = arith.constant 0 : i32
    %11 = vector.broadcast %c0_i32_6 : i32 to vector<128x1xi32>
    %12 = arith.addi %11, %10 : vector<128x1xi32>
    %cst_7 = arith.constant 0.000000e+00 : f32
    %13 = vector.broadcast %cst_7 : f32 to vector<128x32xf32>
    %14 = tpu.iota {dimensions = array<i32: 1>} : vector<128x128xi32>
    %c0_i32_8 = arith.constant 0 : i32
    %15 = vector.broadcast %c0_i32_8 : i32 to vector<128x128xi32>
    %16 = arith.addi %15, %14 : vector<128x128xi32>
    %17 = vector.broadcast %12 : vector<128x1xi32> to vector<128x128xi32>
    %18 = arith.cmpi eq, %16, %17 : vector<128x128xi32>
    %19 = arith.extui %18 : vector<128x128xi1> to vector<128x128xi32>
    %20 = arith.sitofp %19 : vector<128x128xi32> to vector<128x128xf32>
    %cst_9 = arith.constant dense<0.000000e+00> : vector<128xf32>
    %21 = vector.multi_reduction <add>, %20, %cst_9 [0] : vector<128x128xf32> to vector<128xf32>
    %22 = vector.shape_cast %21 : vector<128xf32> to vector<1x1x128xf32>
    %c0_10 = arith.constant 0 : index
    %c0_11 = arith.constant 0 : index
    %c0_12 = arith.constant 0 : index
    %23 = vector.load %arg7[%c0_10, %c0_11, %c0_12] : memref<1x1x128xf32, #tpu.memory_space<vmem>>, vector<1x1x128xf32>
    %24 = arith.addf %23, %22 : vector<1x1x128xf32>
    %c0_13 = arith.constant 0 : index
    %c0_14 = arith.constant 0 : index
    %c0_15 = arith.constant 0 : index
    %25 = vector.load %arg7[%c0_13, %c0_14, %c0_15] : memref<1x1x128xf32, #tpu.memory_space<vmem>>, vector<1x1x128xf32>
    tpu.vector_store %arg7[%c0_13, %c0_14, %c0_15], %24 {strides = array<i32>} : memref<1x1x128xf32, #tpu.memory_space<vmem>>, vector<1x1x128xf32>,
    %c0_16 = arith.constant 0 : index
    %c0_17 = arith.constant 0 : index
    %26 = vector.load %arg4[%c0_16, %c0_17] : memref<128x32xf32, #tpu.memory_space<vmem>>, vector<128x32xf32>
    %cst_18 = arith.constant dense<0.000000e+00> : vector<128x32xf32>
    %27 = tpu.matmul %20, %26, %cst_18 {dimension_numbers = #tpu.dot_dimension_numbers<[1], [0], [0], [1], [0, 0, 1, 1], [], []>} : vector<128x128xf32>, vector<128x32xf32>, vector<128x32xf32> -> vector<128x32xf32>
    %28 = arith.addf %13, %27 : vector<128x32xf32>
    %29 = arith.subf %28, %3 : vector<128x32xf32>
    %30 = arith.addf %3, %29 : vector<128x32xf32>
    %c0_19 = arith.constant 0 : index
    %c0_20 = arith.constant 0 : index
    %31 = vector.load %arg6[%c0_19, %c0_20] : memref<128x32xf32, #tpu.memory_space<vmem>>, vector<128x32xf32>
    tpu.vector_store %arg6[%c0_19, %c0_20], %30 {strides = array<i32>} : memref<128x32xf32, #tpu.memory_space<vmem>>, vector<128x32xf32>,
    %c0_21 = arith.constant 0 : index
    %c0_22 = arith.constant 0 : index
    %c0_23 = arith.constant 0 : index
    %32 = vector.load %arg8[%c0_21, %c0_22, %c0_23] : memref<1x1x32xf32, #tpu.memory_space<vmem>>, vector<1x1x32xf32>
    %33 = arith.mulf %29, %29 : vector<128x32xf32>
    %cst_24 = arith.constant dense<0.000000e+00> : vector<32xf32>
    %34 = vector.multi_reduction <add>, %33, %cst_24 [0] : vector<128x32xf32> to vector<32xf32>
    %35 = vector.shape_cast %34 : vector<32xf32> to vector<1x1x32xf32>
    %36 = arith.addf %32, %35 : vector<1x1x32xf32>
    %c0_25 = arith.constant 0 : index
    %c0_26 = arith.constant 0 : index
    %c0_27 = arith.constant 0 : index
    %37 = vector.load %arg8[%c0_25, %c0_26, %c0_27] : memref<1x1x32xf32, #tpu.memory_space<vmem>>, vector<1x1x32xf32>
    tpu.vector_store %arg8[%c0_25, %c0_26, %c0_27], %36 {strides = array<i32>} : memref<1x1x32xf32, #tpu.memory_space<vmem>>, vector<1x1x32xf32>,
    return
  }
  func.func @transform_0(%arg0: i32, %arg1: i32) -> (i32, i32) {
    %c1_i32 = arith.constant 1 : i32
    %0 = arith.muli %arg0, %c1_i32 : i32
    %1 = arith.addi %0, %arg1 : i32
    %c0_i32 = arith.constant 0 : i32
    %c0_i32_0 = arith.constant 0 : i32
    return %1, %c0_i32 : i32, i32
  }
  func.func @transform_1(%arg0: i32, %arg1: i32) -> (i32, i32) {
    %c0_i32 = arith.constant 0 : i32
    %c0_i32_0 = arith.constant 0 : i32
    %c0_i32_1 = arith.constant 0 : i32
    return %c0_i32, %c0_i32_0 : i32, i32
  }
  func.func @transform_2(%arg0: i32, %arg1: i32) -> (i32, i32) {
    %c0_i32 = arith.constant 0 : i32
    %c0_i32_0 = arith.constant 0 : i32
    %c0_i32_1 = arith.constant 0 : i32
    return %c0_i32, %c0_i32_0 : i32, i32
  }
  func.func @transform_3(%arg0: i32, %arg1: i32) -> (i32, i32) {
    %c0_i32 = arith.constant 0 : i32
    %c0_i32_0 = arith.constant 0 : i32
    %c0_i32_1 = arith.constant 0 : i32
    return %c0_i32, %c0_i32_0 : i32, i32
  }
  func.func @transform_4(%arg0: i32, %arg1: i32) -> (i32, i32) {
    %c1_i32 = arith.constant 1 : i32
    %0 = arith.muli %arg0, %c1_i32 : i32
    %1 = arith.addi %0, %arg1 : i32
    %c0_i32 = arith.constant 0 : i32
    %c0_i32_0 = arith.constant 0 : i32
    return %1, %c0_i32 : i32, i32
  }
  func.func @transform_5(%arg0: i32, %arg1: i32) -> (i32, i32, i32) {
    %c0_i32 = arith.constant 0 : i32
    %c0_i32_0 = arith.constant 0 : i32
    %c0_i32_1 = arith.constant 0 : i32
    return %arg0, %c0_i32, %c0_i32_0 : i32, i32, i32
  }
  func.func @transform_6(%arg0: i32, %arg1: i32) -> (i32, i32, i32) {
    %c0_i32 = arith.constant 0 : i32
    %c0_i32_0 = arith.constant 0 : i32
    %c0_i32_1 = arith.constant 0 : i32
    return %arg0, %c0_i32, %c0_i32_0 : i32, i32, i32
  }
}

</mosaic_0001>

<bundles_post_ra>
// kernel: tpu_custom_call.1
= control target key start
LH: loop header
LB: loop body
LE: loop exit
PB: predicated region body
PF: predicated region fallthrough
CT: control target
= control target key end

     0   :  { %12 = vsyncpa [#allocation3], 0  ;;  %vm92_vm0 = vcmask 261120   ;;  %s1373_s0 = inlined_call_operand.vmem [shape: f32[128,32], index: 0, kind: input, shape index: {}]   ;;  %s1374_s1 = inlined_call_operand.vmem [shape: f32[32,128], index: 1, kind: input, shape index: {}]   ;;  %s1375_s2 = inlined_call_operand.vmem [shape: f32[128,32], index: 2, kind: input, shape index: {}]   ;;  %s1376_s3 = inlined_call_operand.vmem [shape: f32[1,128], index: 3, kind: input, shape index: {}]   ;;  %s1377_s4 = inlined_call_operand.vmem [shape: f32[128,32], index: 4, kind: output, shape index: {0}]   ;;  %s1378_s5 = inlined_call_operand.hbm [shape: f32[1,1,128], index: 5, kind: output, shape index: {1}]   ;;  %s1379_s6 = inlined_call_operand.hbm [shape: f32[1,1,32], index: 6, kind: output, shape index: {2}]  }
   0x1   :  { %v84_v0 = vld [vmem:[%s1374_s1 + $0x18] sm:$0xff]  ;;  %v83_v1 = vld [vmem:[%s1374_s1 + $0x10] sm:$0xff]  ;;  %v1035_v2 = vld [vmem:[%s1373_s0] sm:$0xff] }
   0x2   :  { %819 = vmatprep.subr.mxu0 %v84_v0  ;;  %v82_v3 = vld [vmem:[%s1374_s1 + $0x8] sm:$0xff]  ;;  %827 = vmatprep.mubr.msk.f32.mxu0 %vm92_vm0, %v1035_v2  ;;  %v81_v4 = vld [vmem:[%s1374_s1] sm:$0xff] }
   0x3   :  { %820 = vmatpush3.msra.mxu0 %v84_v0  ;;  %v1048_v5 = vld [vmem:[%s1373_s0 + $0x8] sm:$0xff] }
   0x4   :  { %821 = vmatprep.subr.mxu0 %v83_v1 }
   0x5   :  { %822 = vmatpush3.msra.mxu0 %v83_v1 }
   0x6   :  { %823 = vmatprep.subr.mxu0 %v82_v3 }
   0x7   :  { %824 = vmatpush3.msra.mxu0 %v82_v3 }
   0x8   :  { %13 = vsyncpa [#allocation5], 0  ;;  %825 = vmatprep.subr.mxu0 %v81_v4  ;;  %v1053_v6 = vld [vmem:[%s1373_s0 + $0x10] sm:$0xff]  ;;  %v1062_v7 = vld [vmem:[%s1373_s0 + $0x18] sm:$0xff]  ;;  %v987_v50 = vmov 0.0  }
   0x9   :  { %826 = vmatpush3.msra.mxu0 %v81_v4  ;;  %v1067_v8 = vld [vmem:[%s1373_s0 + $0x20] sm:$0xff]  ;;  %v1076_v9 = vld [vmem:[%s1373_s0 + $0x28] sm:$0xff]  ;;  %v1081_v10 = vld [vmem:[%s1373_s0 + $0x30] sm:$0xff]  ;;  %62 = vst [vmem:[#allocation2] sm:$0x1] %v987_v50 }
   0xa   :  { %828 = vmatmul.mubr.msk.f32.vlgmr.msra.gmra.mxu0 %vm92_vm0, %v1048_v5  ;;  %v1090_v11 = vld [vmem:[%s1373_s0 + $0x38] sm:$0xff]  ;;  %v1095_v12 = vld [vmem:[%s1373_s0 + $0x40] sm:$0xff]  ;;  %v1104_v13 = vld [vmem:[%s1373_s0 + $0x48] sm:$0xff] }
   0xb   :  { %830 = vmatprep.mubr.msk.f32.mxu0 %vm92_vm0, %v1053_v6  ;;  %v1109_v14 = vld [vmem:[%s1373_s0 + $0x50] sm:$0xff]  ;;  %v1118_v15 = vld [vmem:[%s1373_s0 + $0x58] sm:$0xff]  ;;  %v1123_v16 = vld [vmem:[%s1373_s0 + $0x60] sm:$0xff] }
   0xc   :  { %v1132_v17 = vld [vmem:[%s1373_s0 + $0x68] sm:$0xff]  ;;  %v1137_v18 = vld [vmem:[%s1373_s0 + $0x70] sm:$0xff]  ;;  %v1146_v19 = vld [vmem:[%s1373_s0 + $0x78] sm:$0xff] }
   0xd   :  { %v407_v20 = vld [vmem:[%s1375_s2 + $0x78] sm:$0xff]  ;;  %v406_v21 = vld [vmem:[%s1375_s2 + $0x70] sm:$0xff]  ;;  %v405_v22 = vld [vmem:[%s1375_s2 + $0x68] sm:$0xff] }
   0xe   :  { %831 = vmatmul.mubr.msk.f32.gmra.mxu0 %vm92_vm0, %v1062_v7  ;;  %851 = vmatprep.subr.mxu0 %v407_v20  ;;  %v404_v23 = vld [vmem:[%s1375_s2 + $0x60] sm:$0xff]  ;;  %v403_v24 = vld [vmem:[%s1375_s2 + $0x58] sm:$0xff]  ;;  %v402_v25 = vld [vmem:[%s1375_s2 + $0x50] sm:$0xff] }
   0xf   :  { %833 = vmatprep.mubr.msk.f32.mxu0 %vm92_vm0, %v1067_v8  ;;  %907 = vmatprep.subr.mxu1 %v407_v20  ;;  %v401_v26 = vld [vmem:[%s1375_s2 + $0x48] sm:$0xff]  ;;  %v400_v27 = vld [vmem:[%s1375_s2 + $0x40] sm:$0xff]  ;;  %v399_v28 = vld [vmem:[%s1375_s2 + $0x38] sm:$0xff] }
  0x10   :  { %852 = vmatpush3.msra.mxu0 %v407_v20  ;;  %923 = vmatpush3.msra.mxu1 %v407_v20  ;;  %v398_v29 = vld [vmem:[%s1375_s2 + $0x30] sm:$0xff]  ;;  %v397_v30 = vld [vmem:[%s1375_s2 + $0x28] sm:$0xff]  ;;  %v396_v31 = vld [vmem:[%s1375_s2 + $0x20] sm:$0xff] }
  0x11   :  { %853 = vmatprep.subr.mxu0 %v406_v21  ;;  %908 = vmatprep.subr.mxu1 %v406_v21  ;;  %v395_v32 = vld [vmem:[%s1375_s2 + $0x18] sm:$0xff]  ;;  %v394_v33 = vld [vmem:[%s1375_s2 + $0x10] sm:$0xff]  ;;  %v718_v35 = vld [vmem:[%s1376_s3] ss:$0 sm:$0xff] }
  0x12   :  { %834 = vmatmul.mubr.msk.f32.gmra.mxu0 %vm92_vm0, %v1076_v9  ;;  %924 = vmatpush3.msra.mxu1 %v406_v21  ;;  %v393_v51 = vld [vmem:[%s1375_s2 + $0x8] sm:$0xff]  ;;  %v392_v53 = vld [vmem:[%s1375_s2] sm:$0xff]  ;;  %s989_s2 = smov [#allocation2]  }
  0x13   :  { %836 = vmatprep.mubr.msk.f32.mxu0 %vm92_vm0, %v1081_v10  ;;  %854 = vmatpush3.msra.mxu0 %v406_v21  ;;  %s674_s17 = sshll.u32 %s989_s2, 4  ;;  %s675_s17 = int_to_ptr.vmem [resolvable:$true] %s674_s17 }
  0x14   :  { %855 = vmatprep.subr.mxu0 %v405_v22  ;;  %909 = vmatprep.subr.mxu1 %v405_v22  ;;  %s943_s18 = scalar_lea.vmem %s675_s17, 16  ;;  %s947_s19 = scalar_lea.vmem %s675_s17, 32 }
  0x15   :  { %856 = vmatpush3.msra.mxu0 %v405_v22  ;;  %925 = vmatpush3.msra.mxu1 %v405_v22  ;;  %v318_v22 = vlaneseq  ;;  %p944_p0 = scmp.ne.s32.totalorder %s675_s17, %s943_s18  ;;  %p948_p1 = scmp.lt.s32.totalorder %s675_s17, %s675_s17 }
  0x16   :  { %837 = vmatmul.mubr.msk.f32.gmra.mxu0 %vm92_vm0, %v1090_v11  ;;  %857 = vmatprep.subr.mxu0 %v404_v23  ;;  %p949_p2 = scmp.lt.s32.totalorder %s947_s19, %s943_s18 }
  0x17   :  { %839 = vmatprep.mubr.msk.f32.mxu0 %vm92_vm0, %v1095_v12  ;;  %910 = vmatprep.subr.mxu1 %v404_v23 }
  0x18   :  { %858 = vmatpush3.msra.mxu0 %v404_v23  ;;  %926 = vmatpush3.msra.mxu1 %v404_v23  ;;  %v1202_v23 = vand.u32 127, %v318_v22  ;;  %p950_p3 = por %p949_p2, %p948_p1 }
  0x19   :  { %859 = vmatprep.subr.mxu0 %v403_v24  ;;  %911 = vmatprep.subr.mxu1 %v403_v24 }
  0x1a   :  { %840 = vmatmul.mubr.msk.f32.gmra.mxu0 %vm92_vm0, %v1104_v13  ;;  %927 = vmatpush3.msra.mxu1 %v403_v24  ;;  %p951_p4 = pnand %p950_p3, %p944_p0 }
  0x1b   :  { %842 = vmatprep.mubr.msk.f32.mxu0 %vm92_vm0, %v1109_v14  ;;  %860 = vmatpush3.msra.mxu0 %v403_v24 }
  0x1c   :  { %861 = vmatprep.subr.mxu0 %v402_v25  ;;  %912 = vmatprep.subr.mxu1 %v402_v25 }
  0x1d   :  { %862 = vmatpush3.msra.mxu0 %v402_v25  ;;  %928 = vmatpush3.msra.mxu1 %v402_v25  ;;  %v988_v25 = vmov 1.0  }
  0x1e   :  { %843 = vmatmul.mubr.msk.f32.gmra.mxu0 %vm92_vm0, %v1118_v15  ;;  %863 = vmatprep.subr.mxu0 %v401_v26 }
  0x1f   :  { %845 = vmatprep.mubr.msk.f32.mxu0 %vm92_vm0, %v1123_v16  ;;  %913 = vmatprep.subr.mxu1 %v401_v26 }
  0x20   :  { %864 = vmatpush3.msra.mxu0 %v401_v26  ;;  %929 = vmatpush3.msra.mxu1 %v401_v26 }
  0x21   :  { %865 = vmatprep.subr.mxu0 %v400_v27  ;;  %914 = vmatprep.subr.mxu1 %v400_v27 }
  0x22   :  { %846 = vmatmul.mubr.msk.f32.gmra.mxu0 %vm92_vm0, %v1132_v17  ;;  %930 = vmatpush3.msra.mxu1 %v400_v27 }
  0x23   :  { %848 = vmatprep.mubr.msk.f32.mxu0 %vm92_vm0, %v1137_v18  ;;  %866 = vmatpush3.msra.mxu0 %v400_v27 }
  0x24   :  { %867 = vmatprep.subr.mxu0 %v399_v28  ;;  %915 = vmatprep.subr.mxu1 %v399_v28 }
  0x25   :  { %868 = vmatpush3.msra.mxu0 %v399_v28  ;;  %931 = vmatpush3.msra.mxu1 %v399_v28 }
  0x26   :  { %849 = vmatmul.mubr.msk.f32.gmra.mxu0 %vm92_vm0, %v1146_v19  ;;  %869 = vmatprep.subr.mxu0 %v398_v29 }
  0x27   :  { %916 = vmatprep.subr.mxu1 %v398_v29  ;;  %870 = vmatpush3.msra.mxu0 %v398_v29 }
  0x28   :  { %932 = vmatpush3.msra.mxu1 %v398_v29  ;;  %871 = vmatprep.subr.mxu0 %v397_v30 }
  0x29   :  { %917 = vmatprep.subr.mxu1 %v397_v30  ;;  %872 = vmatpush3.msra.mxu0 %v397_v30 }
  0x2a   :  { %933 = vmatpush3.msra.mxu1 %v397_v30  ;;  %873 = vmatprep.subr.mxu0 %v396_v31 }
  0x2b   :  { %918 = vmatprep.subr.mxu1 %v396_v31  ;;  %874 = vmatpush3.msra.mxu0 %v396_v31 }
  0x2c   :  { %934 = vmatpush3.msra.mxu1 %v396_v31  ;;  %875 = vmatprep.subr.mxu0 %v395_v32 }
  0x2d   :  { %919 = vmatprep.subr.mxu1 %v395_v32  ;;  %876 = vmatpush3.msra.mxu0 %v395_v32 }
  0x2e   :  { %935 = vmatpush3.msra.mxu1 %v395_v32  ;;  %877 = vmatprep.subr.mxu0 %v394_v33 }
  0x2f   :  { %920 = vmatprep.subr.mxu1 %v394_v33  ;;  %878 = vmatpush3.msra.mxu0 %v394_v33 }
  0x30   :  { %936 = vmatpush3.msra.mxu1 %v394_v33  ;;  %879 = vmatprep.subr.mxu0 %v393_v51 }
  0x31   :  { %921 = vmatprep.subr.mxu1 %v393_v51  ;;  %880 = vmatpush3.msra.mxu0 %v393_v51 }
  0x32   :  { %937 = vmatpush3.msra.mxu1 %v393_v51  ;;  %881 = vmatprep.subr.mxu0 %v392_v53 }
  0x33   :  { %922 = vmatprep.subr.mxu1 %v392_v53  ;;  %882 = vmatpush3.msra.mxu0 %v392_v53 }
  0x34   :  { %938 = vmatpush3.msra.mxu1 %v392_v53 }
  0xca   :  { %v829_v34 = vpop.f32.mrf.mxu0 }
  0xcb   :  { %v213_v40 = vadd.f32 %v829_v34, %v718_v35 }
  0xcc   :  { %v207_v36 = vpop.f32.mrf.mxu0 }
  0xcd   :  { %v208_v37 = vadd.f32 %v718_v35, %v207_v36 }
  0xce   :  { %v832_v38 = vpop.f32.mrf.mxu0 }
  0xcf   :  { %286 = vmax.index.xlane.f32.xlu0 %v208_v37  ;;  %v223_v44 = vadd.f32 %v832_v38, %v718_v35 }
  0xd0   :  { %v217_v39 = vpop.f32.mrf.mxu0 }
  0xd1   :  { %v218_v41 = vadd.f32 %v718_v35, %v217_v39 }
  0xd2   :  { %v835_v42 = vpop.f32.mrf.mxu0 }
  0xd3   :  { %290 = vmax.index.xlane.f32.xlu1 %v218_v41  ;;  %288 = vmax.index.xlane.f32.xlu0 %v213_v40  ;;  %v233_v48 = vadd.f32 %v835_v42, %v718_v35 }
  0xd4   :  { %v227_v43 = vpop.f32.mrf.mxu0 }
  0xd5   :  { %v228_v45 = vadd.f32 %v718_v35, %v227_v43 }
  0xd6   :  { %v838_v46 = vpop.f32.mrf.mxu0 }
  0xd7   :  { %292 = vmax.index.xlane.f32.xlu1 %v223_v44  ;;  %294 = vmax.index.xlane.f32.xlu0 %v228_v45  ;;  %v243_v55 = vadd.f32 %v838_v46, %v718_v35 }
  0xd8   :  { %v237_v47 = vpop.f32.mrf.mxu0 }
  0xd9   :  { %v238_v49 = vadd.f32 %v718_v35, %v237_v47 }
  0xda   :  { %v841_v52 = vpop.f32.mrf.mxu0 }
  0xdb   :  { %296 = vmax.index.xlane.f32.xlu1 %v233_v48  ;;  %298 = vmax.index.xlane.f32.xlu0 %v238_v49  ;;  %v253_v59 = vadd.f32 %v841_v52, %v718_v35 }
  0xdc   :  { %v247_v54 = vpop.f32.mrf.mxu0 }
  0xdd   :  { %v248_v56 = vadd.f32 %v718_v35, %v247_v54 }
  0xde   :  { %v844_v57 = vpop.f32.mrf.mxu0 }
  0xdf   :  { %300 = vmax.index.xlane.f32.xlu1 %v243_v55  ;;  %302 = vmax.index.xlane.f32.xlu0 %v248_v56  ;;  %v263_v63 = vadd.f32 %v844_v57, %v718_v35 }
  0xe0   :  { %v257_v58 = vpop.f32.mrf.mxu0 }
  0xe1   :  { %v258_v60 = vadd.f32 %v718_v35, %v257_v58 }
  0xe2   :  { %v847_v61 = vpop.f32.mrf.mxu0 }
  0xe3   :  { %304 = vmax.index.xlane.f32.xlu1 %v253_v59  ;;  %306 = vmax.index.xlane.f32.xlu0 %v258_v60  ;;  %v273_v4 = vadd.f32 %v847_v61, %v718_v35 }
  0xe4   :  { %v267_v62 = vpop.f32.mrf.mxu0 }
  0xe5   :  { %v268_v0 = vadd.f32 %v718_v35, %v267_v62 }
  0xe6   :  { %v850_v1 = vpop.f32.mrf.mxu0 }
  0xe7   :  { %308 = vmax.index.xlane.f32.xlu1 %v263_v63  ;;  %310 = vmax.index.xlane.f32.xlu0 %v268_v0  ;;  %v283_v21 = vadd.f32 %v850_v1, %v718_v35 }
  0xe8   :  { %v277_v3 = vpop.f32.mrf.mxu0 }
  0xe9   :  { %v278_v20 = vadd.f32 %v718_v35, %v277_v3 }
  0xeb   :  { %312 = vmax.index.xlane.f32.xlu1 %v273_v4  ;;  %314 = vmax.index.xlane.f32.xlu0 %v278_v20 }
  0xef   :  { %316 = vmax.index.xlane.f32.xlu1 %v283_v21 }
 0x158   :  { %v287_v24 = vpop.xlane.xlu0 %286 }
 0x159   :  { %vm320_vm1 = vcmp.eq.s32.totalorder %v1202_v23, %v287_v24 }
 0x15a   :  { %883 = vmatprep.mubr.msk.f32.mxu0 %vm320_vm1, %v988_v25  ;;  %v735_v28 = vsel %vm320_vm1, 1.0, %v987_v50 }
 0x15c   :  { %v291_v26 = vpop.xlane.xlu1 %290  ;;  %v289_v27 = vpop.xlane.xlu0 %288 }
 0x15d   :  { %vm322_vm2 = vcmp.eq.s32.totalorder %v1202_v23, %v291_v26  ;;  %vm321_vm3 = vcmp.eq.s32.totalorder %v1202_v23, %v289_v27 }
 0x15e   :  { %v736_v29 = vsel %vm321_vm3, 1.0, %v987_v50  ;;  %884 = vmatmul.mubr.msk.f32.vlgmr.msra.gmra.mxu0 %vm321_vm3, %v988_v25  ;;  %v737_v31 = vsel %vm322_vm2, 1.0, %v987_v50 }
 0x15f   :  { %v368_v30 = vadd.f32 %v736_v29, %v735_v28  ;;  %886 = vmatprep.mubr.msk.f32.mxu0 %vm322_vm2, %v988_v25  ;;  %vm63_vm2 = vcmask 253952  }
 0x160   :  { %v293_v32 = vpop.xlane.xlu1 %292  ;;  %v295_v33 = vpop.xlane.xlu0 %294  ;;  %64 = vst.msk [vmem:[#allocation4] sm:$0x1] %vm63_vm2, %v987_v50 }
 0x161   :  { %vm323_vm4 = vcmp.eq.s32.totalorder %v1202_v23, %v293_v32  ;;  %v369_v34 = vadd.f32 %v737_v31, %v368_v30  ;;  %vm324_vm5 = vcmp.eq.s32.totalorder %v1202_v23, %v295_v33  ;;  %v389_v32 = vld [vmem:[#allocation2] sm:$0x1] }
 0x162   :  { %v738_v35 = vsel %vm323_vm4, 1.0, %v987_v50  ;;  %v739_v36 = vsel %vm324_vm5, 1.0, %v987_v50  ;;  %887 = vmatmul.mubr.msk.f32.gmra.mxu0 %vm323_vm4, %v988_v25 }
 0x163   :  { %v370_v37 = vadd.f32 %v738_v35, %v369_v34  ;;  %889 = vmatprep.mubr.msk.f32.mxu0 %vm324_vm5, %v988_v25 }
 0x164   :  { %v297_v38 = vpop.xlane.xlu1 %296  ;;  %v299_v39 = vpop.xlane.xlu0 %298 }
 0x165   :  { %v371_v40 = vadd.f32 %v739_v36, %v370_v37  ;;  %vm325_vm6 = vcmp.eq.s32.totalorder %v1202_v23, %v297_v38  ;;  %vm326_vm7 = vcmp.eq.s32.totalorder %v1202_v23, %v299_v39 }
 0x166   :  { %v740_v41 = vsel %vm325_vm6, 1.0, %v987_v50  ;;  %890 = vmatmul.mubr.msk.f32.gmra.mxu0 %vm325_vm6, %v988_v25  ;;  %v741_v42 = vsel %vm326_vm7, 1.0, %v987_v50  ;;  %892 = vmatprep.mubr.msk.f32.mxu1 %vm326_vm7, %v988_v25 }
 0x167   :  { %v372_v43 = vadd.f32 %v740_v41, %v371_v40 }
 0x168   :  { %v301_v44 = vpop.xlane.xlu1 %300  ;;  %v303_v45 = vpop.xlane.xlu0 %302 }
 0x169   :  { %v373_v46 = vadd.f32 %v741_v42, %v372_v43  ;;  %vm327_vm8 = vcmp.eq.s32.totalorder %v1202_v23, %v301_v44  ;;  %vm328_vm9 = vcmp.eq.s32.totalorder %v1202_v23, %v303_v45 }
 0x16a   :  { %v742_v47 = vsel %vm327_vm8, 1.0, %v987_v50  ;;  %v743_v48 = vsel %vm328_vm9, 1.0, %v987_v50  ;;  %893 = vmatmul.mubr.msk.f32.vlgmr.msra.gmra.mxu1 %vm327_vm8, %v988_v25 }
 0x16b   :  { %v374_v49 = vadd.f32 %v742_v47, %v373_v46  ;;  %895 = vmatprep.mubr.msk.f32.mxu1 %vm328_vm9, %v988_v25 }
 0x16c   :  { %v305_v51 = vpop.xlane.xlu1 %304  ;;  %v307_v52 = vpop.xlane.xlu0 %306 }
 0x16d   :  { %v375_v53 = vadd.f32 %v743_v48, %v374_v49  ;;  %vm329_vm10 = vcmp.eq.s32.totalorder %v1202_v23, %v305_v51  ;;  %vm330_vm11 = vcmp.eq.s32.totalorder %v1202_v23, %v307_v52 }
 0x16e   :  { %v744_v54 = vsel %vm329_vm10, 1.0, %v987_v50  ;;  %v745_v55 = vsel %vm330_vm11, 1.0, %v987_v50  ;;  %896 = vmatmul.mubr.msk.f32.gmra.mxu1 %vm329_vm10, %v988_v25 }
 0x16f   :  { %v376_v56 = vadd.f32 %v744_v54, %v375_v53  ;;  %898 = vmatprep.mubr.msk.f32.mxu1 %vm330_vm11, %v988_v25 }
 0x170   :  { %v309_v57 = vpop.xlane.xlu1 %308  ;;  %v311_v58 = vpop.xlane.xlu0 %310 }
 0x171   :  { %v377_v59 = vadd.f32 %v745_v55, %v376_v56  ;;  %vm331_vm12 = vcmp.eq.s32.totalorder %v1202_v23, %v309_v57  ;;  %vm332_vm13 = vcmp.eq.s32.totalorder %v1202_v23, %v311_v58 }
 0x172   :  { %v746_v60 = vsel %vm331_vm12, 1.0, %v987_v50  ;;  %v747_v61 = vsel %vm332_vm13, 1.0, %v987_v50  ;;  %899 = vmatmul.mubr.msk.f32.gmra.mxu1 %vm331_vm12, %v988_v25 }
 0x173   :  { %v378_v62 = vadd.f32 %v746_v60, %v377_v59  ;;  %901 = vmatprep.mubr.msk.f32.mxu1 %vm332_vm13, %v988_v25 }
 0x174   :  { %v313_v63 = vpop.xlane.xlu1 %312  ;;  %v315_v0 = vpop.xlane.xlu0 %314 }
 0x175   :  { %v379_v1 = vadd.f32 %v747_v61, %v378_v62  ;;  %vm333_vm14 = vcmp.eq.s32.totalorder %v1202_v23, %v313_v63  ;;  %vm334_vm15 = vcmp.eq.s32.totalorder %v1202_v23, %v315_v0 }
 0x176   :  { %v748_v3 = vsel %vm333_vm14, 1.0, %v987_v50  ;;  %v749_v4 = vsel %vm334_vm15, 1.0, %v987_v50  ;;  %902 = vmatmul.mubr.msk.f32.gmra.mxu1 %vm333_vm14, %v988_v25 }
 0x177   :  { %v380_v20 = vadd.f32 %v748_v3, %v379_v1  ;;  %904 = vmatprep.mubr.msk.f32.mxu1 %vm334_vm15, %v988_v25 }
 0x178   :  { %v317_v21 = vpop.xlane.xlu1 %316 }
 0x179   :  { %v381_v22 = vadd.f32 %v749_v4, %v380_v20  ;;  %vm335_vm1 = vcmp.eq.s32.totalorder %v1202_v23, %v317_v21 }
 0x17a   :  { %v750_v24 = vsel %vm335_vm1, 1.0, %v987_v50  ;;  %905 = vmatmul.mubr.msk.f32.gmra.mxu1 %vm335_vm1, %v988_v25 }
 0x17b   :  { %v382_v26 = vadd.f32 %v750_v24, %v381_v22 }
 0x17d   :  { %v383_v27 = vrot.slane %v382_v26, 4 }
 0x17f   :  { %v384_v28 = vadd.f32 %v383_v27, %v382_v26 }
 0x181   :  { %v385_v29 = vrot.slane %v384_v28, 2 }
 0x183   :  { %v386_v30 = vadd.f32 %v385_v29, %v384_v28 }
 0x185   :  { %v387_v31 = vrot.slane %v386_v30, 1 }
 0x187   :  { %v388_v33 = vadd.f32 %v387_v31, %v386_v30 }
 0x189   :  { %v390_v34 = vadd.f32 %v389_v32, %v388_v33 }
 0x18b   :  { %391 = vst [vmem:[#allocation2] sm:$0x1] %v390_v34 }
 0x18c   :  { %954 = shalt.err (!%p951_p4)
}
 0x18d   :  { %677 = dma.vmem_to_hbm [thread:$0]  %s675_s17, 16, %s1378_s5, [#allocation3]  }
 0x18e   :  { %s990_s24 = smov [#allocation4]  }
 0x18f   :  { %s684_s25 = sshll.u32 %s990_s24, 4  ;;  %s685_s25 = int_to_ptr.vmem [resolvable:$true] %s684_s25 }
 0x190   :  { %s967_s26 = scalar_lea.vmem %s685_s25, 32  ;;  %p968_p6 = scmp.lt.s32.totalorder %s685_s25, %s685_s25 }
 0x21e   :  { %v885_v23 = vpop.f32.mrf.mxu0 }
 0x21f   :  { %v554_v25 = vsub.f32 %v885_v23, %v1048_v5 }
 0x220   :  { %v474_v35 = vpop.f32.mrf.mxu0 }
 0x221   :  { %v570_v50 = vadd.f32 %v554_v25, %v1048_v5  ;;  %v553_v36 = vsub.f32 %v474_v35, %v1035_v2  ;;  %v603_v38 = vmul.f32 %v554_v25, %v554_v25 }
 0x222   :  { %v888_v37 = vpop.f32.mrf.mxu0 }
 0x223   :  { %586 = vst.msk [vmem:[%s1377_s4 + $0x8] sm:$0xff] %vm92_vm0, %v570_v50  ;;  %v569_v39 = vadd.f32 %v553_v36, %v1035_v2  ;;  %v602_v40 = vmul.f32 %v553_v36, %v553_v36  ;;  %v556_v41 = vsub.f32 %v888_v37, %v1062_v7  ;;  %v619_v47 = vsel %vm92_vm0, %v603_v38, 0.0 }
 0x224   :  { %v484_v42 = vpop.f32.mrf.mxu0 }
 0x225   :  { %585 = vst.msk [vmem:[%s1377_s4] sm:$0xff] %vm92_vm0, %v569_v39  ;;  %v618_v5 = vsel %vm92_vm0, %v602_v40, 0.0  ;;  %v572_v43 = vadd.f32 %v556_v41, %v1062_v7  ;;  %v555_v44 = vsub.f32 %v484_v42, %v1053_v6  ;;  %v605_v45 = vmul.f32 %v556_v41, %v556_v41 }
 0x226   :  { %v891_v46 = vpop.f32.mrf.mxu0  ;;  %v620_v51 = vadd.f32 %v619_v47, %v618_v5 }
 0x227   :  { %588 = vst.msk [vmem:[%s1377_s4 + $0x18] sm:$0xff] %vm92_vm0, %v572_v43  ;;  %v571_v2 = vadd.f32 %v555_v44, %v1053_v6  ;;  %v604_v48 = vmul.f32 %v555_v44, %v555_v44  ;;  %v558_v49 = vsub.f32 %v891_v46, %v1076_v9  ;;  %v623_v55 = vsel %vm92_vm0, %v605_v45, 0.0 }
 0x228   :  { %v494_v52 = vpop.f32.mrf.mxu0 }
 0x229   :  { %587 = vst.msk [vmem:[%s1377_s4 + $0x10] sm:$0xff] %vm92_vm0, %v571_v2  ;;  %v621_v7 = vsel %vm92_vm0, %v604_v48, 0.0  ;;  %v574_v53 = vadd.f32 %v558_v49, %v1076_v9  ;;  %v557_v54 = vsub.f32 %v494_v52, %v1067_v8  ;;  %v607_v57 = vmul.f32 %v558_v49, %v558_v49 }
 0x22a   :  { %v622_v56 = vadd.f32 %v621_v7, %v620_v51  ;;  %v894_v6 = vpop.f32.mrf.mxu1 }
 0x22b   :  { %590 = vst.msk [vmem:[%s1377_s4 + $0x28] sm:$0xff] %vm92_vm0, %v574_v53  ;;  %v573_v58 = vadd.f32 %v557_v54, %v1067_v8  ;;  %v606_v59 = vmul.f32 %v557_v54, %v557_v54  ;;  %v560_v60 = vsub.f32 %v894_v6, %v1090_v11  ;;  %v627_v8 = vsel %vm92_vm0, %v607_v57, 0.0 }
 0x22c   :  { %v624_v61 = vadd.f32 %v623_v55, %v622_v56  ;;  %v504_v62 = vpop.f32.mrf.mxu1 }
 0x22d   :  { %589 = vst.msk [vmem:[%s1377_s4 + $0x20] sm:$0xff] %vm92_vm0, %v573_v58  ;;  %v625_v9 = vsel %vm92_vm0, %v606_v59, 0.0  ;;  %v576_v63 = vadd.f32 %v560_v60, %v1090_v11  ;;  %v559_v0 = vsub.f32 %v504_v62, %v1081_v10  ;;  %v609_v3 = vmul.f32 %v560_v60, %v560_v60 }
 0x22e   :  { %v626_v1 = vadd.f32 %v625_v9, %v624_v61  ;;  %v897_v4 = vpop.f32.mrf.mxu1 }
 0x22f   :  { %592 = vst.msk [vmem:[%s1377_s4 + $0x38] sm:$0xff] %vm92_vm0, %v576_v63  ;;  %v575_v20 = vadd.f32 %v559_v0, %v1081_v10  ;;  %v608_v21 = vmul.f32 %v559_v0, %v559_v0  ;;  %v562_v22 = vsub.f32 %v897_v4, %v1104_v13  ;;  %v631_v29 = vsel %vm92_vm0, %v609_v3, 0.0 }
 0x230   :  { %v628_v24 = vadd.f32 %v627_v8, %v626_v1  ;;  %v514_v26 = vpop.f32.mrf.mxu1  ;;  %v601_v1 = vld [vmem:[#allocation4] sm:$0x1] }
 0x231   :  { %591 = vst.msk [vmem:[%s1377_s4 + $0x30] sm:$0xff] %vm92_vm0, %v575_v20  ;;  %v629_v11 = vsel %vm92_vm0, %v608_v21, 0.0  ;;  %v578_v27 = vadd.f32 %v562_v22, %v1104_v13  ;;  %v561_v28 = vsub.f32 %v514_v26, %v1095_v12  ;;  %v611_v31 = vmul.f32 %v562_v22, %v562_v22 }
 0x232   :  { %v630_v30 = vadd.f32 %v629_v11, %v628_v24  ;;  %v900_v10 = vpop.f32.mrf.mxu1 }
 0x233   :  { %594 = vst.msk [vmem:[%s1377_s4 + $0x48] sm:$0xff] %vm92_vm0, %v578_v27  ;;  %v577_v32 = vadd.f32 %v561_v28, %v1095_v12  ;;  %v610_v33 = vmul.f32 %v561_v28, %v561_v28  ;;  %v564_v34 = vsub.f32 %v900_v10, %v1118_v15  ;;  %v635_v12 = vsel %vm92_vm0, %v611_v31, 0.0 }
 0x234   :  { %v632_v23 = vadd.f32 %v631_v29, %v630_v30  ;;  %v524_v25 = vpop.f32.mrf.mxu1 }
 0x235   :  { %593 = vst.msk [vmem:[%s1377_s4 + $0x40] sm:$0xff] %vm92_vm0, %v577_v32  ;;  %v633_v13 = vsel %vm92_vm0, %v610_v33, 0.0  ;;  %v580_v35 = vadd.f32 %v564_v34, %v1118_v15  ;;  %v563_v50 = vsub.f32 %v524_v25, %v1109_v14  ;;  %v613_v37 = vmul.f32 %v564_v34, %v564_v34 }
 0x236   :  { %v634_v36 = vadd.f32 %v633_v13, %v632_v23  ;;  %v903_v38 = vpop.f32.mrf.mxu1 }
 0x237   :  { %596 = vst.msk [vmem:[%s1377_s4 + $0x58] sm:$0xff] %vm92_vm0, %v580_v35  ;;  %v579_v39 = vadd.f32 %v563_v50, %v1109_v14  ;;  %v612_v40 = vmul.f32 %v563_v50, %v563_v50  ;;  %v566_v41 = vsub.f32 %v903_v38, %v1132_v17  ;;  %v639_v45 = vsel %vm92_vm0, %v613_v37, 0.0 }
 0x238   :  { %v636_v42 = vadd.f32 %v635_v12, %v634_v36  ;;  %v534_v5 = vpop.f32.mrf.mxu1 }
 0x239   :  { %595 = vst.msk [vmem:[%s1377_s4 + $0x50] sm:$0xff] %vm92_vm0, %v579_v39  ;;  %v637_v15 = vsel %vm92_vm0, %v612_v40, 0.0  ;;  %v582_v43 = vadd.f32 %v566_v41, %v1132_v17  ;;  %v565_v44 = vsub.f32 %v534_v5, %v1123_v16  ;;  %v615_v47 = vmul.f32 %v566_v41, %v566_v41 }
 0x23a   :  { %v638_v46 = vadd.f32 %v637_v15, %v636_v42  ;;  %v906_v14 = vpop.f32.mrf.mxu1 }
 0x23b   :  { %598 = vst.msk [vmem:[%s1377_s4 + $0x68] sm:$0xff] %vm92_vm0, %v582_v43  ;;  %v581_v2 = vadd.f32 %v565_v44, %v1123_v16  ;;  %v614_v48 = vmul.f32 %v565_v44, %v565_v44  ;;  %v568_v49 = vsub.f32 %v906_v14, %v1146_v19  ;;  %v643_v55 = vsel %vm92_vm0, %v615_v47, 0.0 }
 0x23c   :  { %v640_v51 = vadd.f32 %v639_v45, %v638_v46  ;;  %v544_v52 = vpop.f32.mrf.mxu1 }
 0x23d   :  { %597 = vst.msk [vmem:[%s1377_s4 + $0x60] sm:$0xff] %vm92_vm0, %v581_v2  ;;  %v641_v17 = vsel %vm92_vm0, %v614_v48, 0.0  ;;  %v584_v7 = vadd.f32 %v568_v49, %v1146_v19  ;;  %v567_v53 = vsub.f32 %v544_v52, %v1137_v18  ;;  %v617_v16 = vmul.f32 %v568_v49, %v568_v49 }
 0x23e   :  { %v642_v54 = vadd.f32 %v641_v17, %v640_v51 }
 0x23f   :  { %600 = vst.msk [vmem:[%s1377_s4 + $0x78] sm:$0xff] %vm92_vm0, %v584_v7  ;;  %v583_v56 = vadd.f32 %v567_v53, %v1137_v18  ;;  %v616_v6 = vmul.f32 %v567_v53, %v567_v53  ;;  %v647_v59 = vsel %vm92_vm0, %v617_v16, 0.0 }
 0x240   :  { %v644_v57 = vadd.f32 %v643_v55, %v642_v54 }
 0x241   :  { %599 = vst.msk [vmem:[%s1377_s4 + $0x70] sm:$0xff] %vm92_vm0, %v583_v56  ;;  %v645_v19 = vsel %vm92_vm0, %v616_v6, 0.0  ;;  %s963_s4 = scalar_lea.vmem %s685_s25, 16 }
 0x242   :  { %v646_v58 = vadd.f32 %v645_v19, %v644_v57  ;;  %p964_p5 = scmp.ne.s32.totalorder %s685_s25, %s963_s4  ;;  %p969_p7 = scmp.lt.s32.totalorder %s967_s26, %s963_s4 }
 0x244   :  { %v648_v60 = vadd.f32 %v647_v59, %v646_v58  ;;  %p970_p8 = por %p969_p7, %p968_p6 }
 0x246   :  { %v649_v61 = vrot.slane %v648_v60, 4  ;;  %p971_p9 = pnand %p970_p8, %p964_p5 }
 0x248   :  { %v650_v62 = vadd.f32 %v649_v61, %v648_v60 }
 0x24a   :  { %v651_v9 = vrot.slane %v650_v62, 2 }
 0x24c   :  { %v652_v63 = vadd.f32 %v651_v9, %v650_v62 }
 0x24e   :  { %v653_v0 = vrot.slane %v652_v63, 1 }
 0x250   :  { %v654_v18 = vadd.f32 %v653_v0, %v652_v63 }
 0x252   :  { %v655_v3 = vadd.f32 %v654_v18, %v601_v1 }
 0x254   :  { %657 = vst.msk [vmem:[#allocation4] sm:$0x1] %vm63_vm2, %v655_v3 }
 0x255   :  { %974 = shalt.err (!%p971_p9)
}
 0x256   :  { %687 = dma.vmem_to_hbm [thread:$0]  %s685_s25, 16, %s1379_s6, [#allocation5]  }
 0x257   :  { %983 = dma.done.wait [#allocation3], 16  }
 0x258   :  { %984 = vsyncadd [#allocation3], 4294967280 }
 0x259   :  { %985 = dma.done.wait [#allocation5], 16  }
 0x25a   :  { %986 = vsyncadd [#allocation5], 4294967280 }
 0x25b   :  { %702 = vsyncpa [#allocation3], 1 }
 0x25c   :  { %703 = vsyncpa [#allocation5], 1 }

</bundles_post_ra>
